<compile_context>
chip_gen: v7x
topology: tpu7x:2x2x1
jax: 0.10.0
libtpu: 0.0.40
codegen_flags: <defaults>
</compile_context>

<pallas_src>
import functools

import jax
import jax.numpy as jnp
from jax.experimental import pallas as pl
from jax.experimental.pallas import tpu as pltpu

LANES = 128


def _round_up(x, m):
    return (x + m - 1) // m * m


def _round_down(x, m):
    return (x // m) * m


def _sublane_granule(*dtypes):
    # min sublane tile: 8 for 4-byte, 16 for 2-byte, 32 for 1-byte dtypes
    return max(max(8, 32 // jnp.dtype(d).itemsize) for d in dtypes)


@functools.lru_cache(maxsize=None)
def _vmem_budget_bytes():
    """Generation-aware VMEM budget (~75% of physical, 64 MiB fallback)."""
    cap = 64 * 1024 * 1024  # conservative default (v7x per-TC physical)
    try:
        info = pltpu.get_tpu_info()
        cap = int(getattr(info, "vmem_capacity_bytes", cap)) or cap
    except Exception:
        pass
    return max(int(cap * 0.75), 16 * 1024 * 1024)


# ----------------------------------------------------------------------------
# Kernel (shared by the lane-dense and the fallback paths)
# ----------------------------------------------------------------------------
def _t2v_cos_kernel(x_ref, w_ref, b_ref, o_ref, *, out_features):
    # z = x @ W + b, f32 accumulation on the MXU.
    z = jnp.dot(x_ref[...], w_ref[...], preferred_element_type=jnp.float32)
    z = z + b_ref[...]
    # cos() on every column except the last one of each out_features-wide
    # segment (the "v2" linear term).  Single full-tile select keeps one
    # unmasked store; VPU/EUP have slack in this HBM-bound regime.
    col = jax.lax.broadcasted_iota(jnp.int32, z.shape, dimension=1)
    res = jnp.where(col % out_features != out_features - 1, jnp.cos(z), z)
    o_ref[...] = res.astype(o_ref.dtype)


# ----------------------------------------------------------------------------
# Parameter packing (do ONCE per parameter update, not per forward call)
# ----------------------------------------------------------------------------
def pack_t2v_params(w, b, w0, b0):
    F = w.shape[0]
    out_features = w.shape[1] + 1
    W = jnp.concatenate([w, w0], axis=-1).astype(jnp.float32)               # (F, out)
    bias = jnp.concatenate([jnp.ravel(b), jnp.ravel(b0)]).astype(jnp.float32)[None, :]

    Wbig = bias_big = None
    if F <= LANES and LANES % F == 0:
        R = LANES // F
        eye = jnp.eye(R, dtype=jnp.float32)
        # Wbig[r*F + f, s*out + o] = W[f, o] if r == s else 0
        Wbig = jnp.einsum("rs,fo->rfso", eye, W).reshape(LANES, R * out_features)
        bias_big = jnp.tile(bias, (1, R))                                   # (1, R*out)

    return {"W": W, "bias": bias, "Wbig": Wbig, "bias_big": bias_big,
            "in_features": F, "out_features": out_features}


# ----------------------------------------------------------------------------
# Lane-dense main path: (rows, 128) @ (128, R*out)
# ----------------------------------------------------------------------------
def _dense_call(tau, Wbig, bias_big, *, out_features, out_dtype, budget, block_rows):
    B, F = tau.shape
    R = LANES // F
    N = Wbig.shape[-1]                       # R * out_features
    rows = (B * F) // LANES                  # lane-dense slab rows (= B // R)
    x = tau.reshape(rows, LANES)             # metadata-only for row-major input

    in_isz = jnp.dtype(tau.dtype).itemsize
    out_isz = jnp.dtype(out_dtype).itemsize
    granule = _sublane_granule(tau.dtype, out_dtype)

    # Padded VMEM bytes per slab row (both blocks are lane-dense => raw == padded).
    row_bytes = LANES * in_isz + N * out_isz
    # Resident params (count x2 buffers conservatively).
    param_bytes = 2 * (LANES * N * 4 + _round_up(1, 8) * N * 4)

    # Largest tile that still double-buffers inside ~90% of the budget.
    usable = int(budget * 0.9) - param_bytes
    max_rows = max(usable // (2 * row_bytes), granule)
    # Keep >= ~8 grid steps (both v7x TCs busy + pipeline fed), but never let a
    # step move less than ~4 MiB of HBM traffic.
    min_rows = pl.cdiv(4 * 1024 * 1024, row_bytes)
    tb = min(max_rows, max(pl.cdiv(rows, 8), min_rows))
    if block_rows is not None:
        tb = min(tb, block_rows)
    if tb >= rows:
        tb = rows                            # single full-extent block
    else:
        tb = max(_round_down(tb, granule), granule)
    grid = (pl.cdiv(rows, tb),)              # ragged last block handled by Pallas

    out = pl.pallas_call(
        functools.partial(_t2v_cos_kernel, out_features=out_features),
        out_shape=jax.ShapeDtypeStruct((rows, N), out_dtype),
        grid=grid,
        in_specs=[
            pl.BlockSpec((tb, LANES), lambda i: (i, 0)),   # lane-dense tau slab
            pl.BlockSpec((LANES, N), lambda i: (0, 0)),    # resident block-diag W
            pl.BlockSpec((1, N), lambda i: (0, 0)),        # resident bias
        ],
        out_specs=pl.BlockSpec((tb, N), lambda i: (i, 0)),  # unmasked dense store
        compiler_params=pltpu.CompilerParams(
            dimension_semantics=("parallel",),             # shard tiles across TCs
            vmem_limit_bytes=int(budget),
        ),
    )(x, Wbig, bias_big)
    return out.reshape(B, out_features)      # metadata-only


# ----------------------------------------------------------------------------
# Lane-sparse fallback (F does not divide 128, or batch < 128/F, or tail)
# ----------------------------------------------------------------------------
def _fallback_call(tau, W, bias, *, out_dtype, budget):
    B, F = tau.shape
    out_features = W.shape[-1]
    in_isz = jnp.dtype(tau.dtype).itemsize
    out_isz = jnp.dtype(out_dtype).itemsize
    granule = _sublane_granule(tau.dtype, out_dtype)

    # Lane-padded VMEM footprint: (tb, F) and (tb, out) each occupy full 128-lane rows.
    row_bytes = LANES * in_isz + LANES * out_isz
    param_bytes = 2 * (_round_up(F, 8) * LANES * 4 + 8 * LANES * 4)
    max_rows = max((int(budget * 0.9) - param_bytes) // (2 * row_bytes), granule)

    if B <= granule:
        tb = B                                # single full-extent block
    else:
        tb = max(min(_round_down(max_rows, granule), _round_down(B, granule)), granule)
    grid = (pl.cdiv(B, tb),)

    return pl.pallas_call(
        functools.partial(_t2v_cos_kernel, out_features=out_features),
        out_shape=jax.ShapeDtypeStruct((B, out_features), out_dtype),
        grid=grid,
        in_specs=[
            pl.BlockSpec((tb, F), lambda i: (i, 0)),
            pl.BlockSpec((F, out_features), lambda i: (0, 0)),
            pl.BlockSpec((1, out_features), lambda i: (0, 0)),
        ],
        out_specs=pl.BlockSpec((tb, out_features), lambda i: (i, 0)),
        compiler_params=pltpu.CompilerParams(
            dimension_semantics=("parallel",),
            vmem_limit_bytes=int(budget),
        ),
    )(tau, W, bias)


# ----------------------------------------------------------------------------
# Public wrappers
# ----------------------------------------------------------------------------
def cosine_activation_packed(tau, params, *, out_dtype=None, block_rows=None):
    """tau: (B, in_features); params: output of pack_t2v_params."""
    B, F = tau.shape
    out_features = params["out_features"]
    out_dtype = tau.dtype if out_dtype is None else jnp.dtype(out_dtype)
    budget = _vmem_budget_bytes()

    if params["Wbig"] is not None:
        R = LANES // F
        bulk = (B // R) * R
        if bulk == B:
            return _dense_call(tau, params["Wbig"], params["bias_big"],
                               out_features=out_features, out_dtype=out_dtype,
                               budget=budget, block_rows=block_rows)
        if bulk > 0:
            # Ragged batch: dense bulk + tiny lane-sparse tail (< 128/F rows),
            # instead of padding/slicing the whole tensor.
            out_bulk = _dense_call(tau[:bulk], params["Wbig"], params["bias_big"],
                                   out_features=out_features, out_dtype=out_dtype,
                                   budget=budget, block_rows=block_rows)
            out_tail = _fallback_call(tau[bulk:], params["W"], params["bias"],
                                      out_dtype=out_dtype, budget=budget)
            return jnp.concatenate([out_bulk, out_tail], axis=0)

    return _fallback_call(tau, params["W"], params["bias"],
                          out_dtype=out_dtype, budget=budget)


def cosine_activation(tau, w, b, w0, b0, **kwargs):
    """Convenience wrapper matching the PyTorch parameter layout."""
    return cosine_activation_packed(tau, pack_t2v_params(w, b, w0, b0), **kwargs)


if __name__ == "__main__":
    in_features, out_features = 4, 8

    key = jax.random.PRNGKey(0)
    k_w, k_b, k_w0, k_b0, k1, k2, k3 = jax.random.split(key, 7)

    w = jax.random.normal(k_w, (in_features, out_features - 1), jnp.float32)
    b = jax.random.normal(k_b, (out_features - 1,), jnp.float32)
    w0 = jax.random.normal(k_w0, (in_features, 1), jnp.float32)
    b0 = jax.random.normal(k_b0, (1,), jnp.float32)

    params = pack_t2v_params(w, b, w0, b0)   # once, outside the hot path

    def ref(tau):
        return jnp.concatenate([jnp.cos(tau @ w + b), tau @ w0 + b0], axis=-1)

    # 1) tiny batch (< 128/F rows): lane-sparse fallback path
    tau_small = jax.random.normal(k1, (8, in_features), jnp.float32)
    out_small = jax.block_until_ready(cosine_activation_packed(tau_small, params))
    assert out_small.shape == (8, out_features)
    assert jnp.allclose(out_small, ref(tau_small), atol=1e-4, rtol=1e-5)

    # 2) lane-dense block-diagonal path, forced multi-tile grid
    tau_big = jax.random.normal(k2, (2048, in_features), jnp.float32)
    out_big = jax.block_until_ready(
        cosine_activation_packed(tau_big, params, block_rows=8))
    assert out_big.shape == (2048, out_features)
    assert jnp.allclose(out_big, ref(tau_big), atol=1e-4, rtol=1e-5)

    # 3) ragged batch: dense bulk + small fallback tail (no whole-tensor pad/slice)
    tau_rag = jax.random.normal(k3, (2048 + 20, in_features), jnp.float32)
    out_rag = jax.block_until_ready(cosine_activation_packed(tau_rag, params))
    assert out_rag.shape == (2068, out_features)
    assert jnp.allclose(out_rag, ref(tau_rag), atol=1e-4, rtol=1e-5)

    # 4) opt-in bf16 output stream (cuts HBM write traffic ~2x)
    out_bf16 = jax.block_until_ready(
        cosine_activation_packed(tau_big, params, out_dtype=jnp.bfloat16))
    assert out_bf16.dtype == jnp.bfloat16
    assert jnp.allclose(out_bf16.astype(jnp.float32), ref(tau_big),
                        atol=5e-2, rtol=5e-2)

    print("KERNEL_OK")
</pallas_src>

<mosaic_0001>
module attributes {stable_mosaic.version = 11 : i64} {
  func.func @_t2v_cos_kernel(%arg0: i32, %arg1: memref<8x4xf32, #tpu.memory_space<vmem>>, %arg2: memref<4x8xf32, #tpu.memory_space<vmem>>, %arg3: memref<1x8xf32, #tpu.memory_space<vmem>>, %arg4: memref<8x8xf32, #tpu.memory_space<vmem>>) attributes {dimension_semantics = [#tpu.dimension_semantics<parallel>], iteration_bounds = array<i64: 1>, scalar_prefetch = 0 : i64, scratch_operands = 0 : i64, tpu.core_type = #tpu.core_type<tc>, window_params = [{transform_indices = @transform_0, window_bounds = array<i64: 8, 4>}, {pipeline_mode = #tpu.pipeline_mode<synchronous>, transform_indices = @transform_1, window_bounds = array<i64: 4, 8>}, {pipeline_mode = #tpu.pipeline_mode<synchronous>, transform_indices = @transform_2, window_bounds = array<i64: 1, 8>}, {transform_indices = @transform_3, window_bounds = array<i64: 8, 8>}]} {
    %c0 = arith.constant 0 : index
    %c0_0 = arith.constant 0 : index
    %0 = vector.load %arg1[%c0, %c0_0] : memref<8x4xf32, #tpu.memory_space<vmem>>, vector<8x4xf32>
    %c0_1 = arith.constant 0 : index
    %c0_2 = arith.constant 0 : index
    %1 = vector.load %arg2[%c0_1, %c0_2] : memref<4x8xf32, #tpu.memory_space<vmem>>, vector<4x8xf32>
    %cst = arith.constant dense<0.000000e+00> : vector<8x8xf32>
    %2 = tpu.matmul %0, %1, %cst {dimension_numbers = #tpu.dot_dimension_numbers<[1], [0], [0], [1], [0, 0, 1, 1], [], []>} : vector<8x4xf32>, vector<4x8xf32>, vector<8x8xf32> -> vector<8x8xf32>
    %c0_3 = arith.constant 0 : index
    %c0_4 = arith.constant 0 : index
    %3 = vector.load %arg3[%c0_3, %c0_4] : memref<1x8xf32, #tpu.memory_space<vmem>>, vector<1x8xf32>
    %4 = vector.broadcast %3 : vector<1x8xf32> to vector<8x8xf32>
    %5 = arith.addf %2, %4 : vector<8x8xf32>
    %6 = tpu.iota {dimensions = array<i32: 1>} : vector<8x8xi32>
    %c8_i32 = arith.constant 8 : i32
    %c0_i32 = arith.constant 0 : i32
    %7 = arith.cmpi eq, %c8_i32, %c0_i32 : i32
    %c1_i32 = arith.constant 1 : i32
    %8 = arith.select %7, %c1_i32, %c8_i32 : i32
    %9 = vector.broadcast %8 : i32 to vector<8x8xi32>
    %10 = arith.remsi %6, %9 : vector<8x8xi32>
    %c0_i32_5 = arith.constant 0 : i32
    %11 = vector.broadcast %c0_i32_5 : i32 to vector<8x8xi32>
    %12 = arith.cmpi ne, %10, %11 : vector<8x8xi32>
    %c0_i32_6 = arith.constant 0 : i32
    %13 = vector.broadcast %c0_i32_6 : i32 to vector<8x8xi32>
    %14 = arith.cmpi slt, %10, %13 : vector<8x8xi32>
    %c0_i32_7 = arith.constant 0 : i32
    %15 = arith.cmpi slt, %8, %c0_i32_7 : i32
    %16 = vector.broadcast %15 : i1 to vector<8x8xi1>
    %17 = vector.broadcast %16 : vector<8x8xi1> to vector<8x8xi1>
    %18 = arith.xori %14, %17 : vector<8x8xi1>
    %19 = arith.andi %18, %12 : vector<8x8xi1>
    %20 = vector.broadcast %8 : i32 to vector<8x8xi32>
    %21 = arith.addi %10, %20 : vector<8x8xi32>
    %22 = arith.select %19, %21, %10 : vector<8x8xi1>, vector<8x8xi32>
    %c7_i32 = arith.constant 7 : i32
    %23 = vector.broadcast %c7_i32 : i32 to vector<8x8xi32>
    %24 = arith.cmpi ne, %22, %23 : vector<8x8xi32>
    %25 = math.cos %5 : vector<8x8xf32>
    %26 = arith.select %24, %25, %5 : vector<8x8xi1>, vector<8x8xf32>
    %c0_8 = arith.constant 0 : index
    %c0_9 = arith.constant 0 : index
    %27 = vector.load %arg4[%c0_8, %c0_9] : memref<8x8xf32, #tpu.memory_space<vmem>>, vector<8x8xf32>
    tpu.vector_store %arg4[%c0_8, %c0_9], %26 {strides = array<i32>} : memref<8x8xf32, #tpu.memory_space<vmem>>, vector<8x8xf32>,
    return
  }
  func.func @transform_0(%arg0: i32) -> (i32, i32) {
    %c0_i32 = arith.constant 0 : i32
    %c0_i32_0 = arith.constant 0 : i32
    return %arg0, %c0_i32 : i32, i32
  }
  func.func @transform_1(%arg0: i32) -> (i32, i32) {
    %c0_i32 = arith.constant 0 : i32
    %c0_i32_0 = arith.constant 0 : i32
    %c0_i32_1 = arith.constant 0 : i32
    return %c0_i32, %c0_i32_0 : i32, i32
  }
  func.func @transform_2(%arg0: i32) -> (i32, i32) {
    %c0_i32 = arith.constant 0 : i32
    %c0_i32_0 = arith.constant 0 : i32
    %c0_i32_1 = arith.constant 0 : i32
    return %c0_i32, %c0_i32_0 : i32, i32
  }
  func.func @transform_3(%arg0: i32) -> (i32, i32) {
    %c0_i32 = arith.constant 0 : i32
    %c0_i32_0 = arith.constant 0 : i32
    return %arg0, %c0_i32 : i32, i32
  }
}

</mosaic_0001>

<bundles_post_ra>
// kernel: tpu_custom_call.1
= control target key start
LH: loop header
LB: loop body
LE: loop exit
PB: predicated region body
PF: predicated region fallthrough
CT: control target
= control target key end

     0   :  { %vm28_vm0 = vcmask 1043456   ;;  %v292_v2 = vmov 0.0   ;;  %vm293_vm1 = vmmov 0   ;;  %vm24_vm2 = vcmask 31744   ;;  %s364_s0 = inlined_call_operand.vmem [shape: f32[8,4], index: 0, kind: input, shape index: {}]   ;;  %s365_s1 = inlined_call_operand.vmem [shape: f32[4,8], index: 1, kind: input, shape index: {}]   ;;  %s366_s2 = inlined_call_operand.vmem [shape: f32[1,8], index: 2, kind: input, shape index: {}]   ;;  %s367_s3 = inlined_call_operand.hbm [shape: f32[8,8], index: 3, kind: output, shape index: {}]  }
   0x1   :  { %v16_v0 = vld [vmem:[%s365_s1] sm:$0xf]  ;;  %246 = vmatprep.subr.mxu0 %v292_v2  ;;  %248 = vmatprep.mubr.msk.f32.mxu0 %vm293_vm1, %v292_v2 }
   0x2   :  { %v15_v1 = vld [vmem:[%s364_s0] sm:$0xff] }
   0x3   :  { %8 = vsyncpa [#allocation3], 0  ;;  %247 = vmatpush3.msk.msra.mxu0 %vm28_vm0, %v16_v0  ;;  %v237_v3 = vld [vmem:[%s366_s2] ss:$0 sm:$0xff]  ;;  %v294_v17 = vmov 683565275  }
   0x4   :  { %249 = vmatmul.mubr.msk.f32.vlgmr.msra.gmra.mrb[0].mxu0 %vm24_vm2, %v15_v1  ;;  %v295_v19 = vmov 2475754826   ;;  %v296_v22 = vmov 2131351028   ;;  %v297_v25 = vmov 2102212464  }
   0x5   :  { %v298_v28 = vmov 920167782   ;;  %v299_v31 = vmov 1326507024   ;;  %s300_s0 = smov [#allocation2]   ;;  %vm221_vm1 = vcmask 64512  }
   0x6   :  { %s229_s1 = sshll.u32 %s300_s0, 4  ;;  %s230_s1 = int_to_ptr.vmem [resolvable:$true] %s229_s1 }
   0x7   :  { %s268_s2 = scalar_lea.vmem %s230_s1, 128  ;;  %p273_p1 = scmp.lt.s32.totalorder %s230_s1, %s230_s1 }
   0x8   :  { %p269_p0 = scmp.ne.s32.totalorder %s230_s1, %s268_s2  ;;  %p274_p2 = scmp.lt.s32.totalorder %s268_s2, %s268_s2 }
   0xa   :  { %p275_p3 = por %p274_p2, %p273_p1 }
   0xc   :  { %p276_p4 = pnand %p275_p3, %p269_p0 }
  0xd7   :  { %v98_v4 = vpop.f32.mrb[0].mxu0 }
  0xd8   :  { %v330_v5 = vadd.f32 %v237_v3, %v98_v4  ;;  %v250_v6 = vpop.f32.mrb[1].mxu0 }
  0xda   :  { %v120_v7 = vand.u32 2139095040, %v330_v5  ;;  %v117_v11 = vand.u32 2147483647, %v330_v5  ;;  %vm119_vm10 = vcmp.lt.s32.totalorder %v330_v5, 0  ;;  %vm209_vm0 = vweird.f32 %v330_v5 }
  0xdc   :  { %v121_v8 = vshrl.u32 %v120_v7, 23  ;;  %v124_v15 = vand.u32 8388607, %v117_v11  ;;  %vm118_vm11 = vcmp.le.f32.partialorder %v117_v11, 0.7853982 }
  0xde   :  { %v240_v9 = vadd.s32 4294967169, %v121_v8  ;;  %v125_v33 = vor.u32 8388608, %v124_v15 }
  0xe0   :  { %v127_v10 = vadd.s32 1, %v240_v9  ;;  %v165_v47 = vshll.u32 %v125_v33, 8 }
  0xe2   :  { %vm128_vm3 = vcmp.gt.s32.totalorder %v127_v10, 0 }
  0xe3   :  { %v129_v12 = vsel %vm128_vm3, %v127_v10, 0 }
  0xe4   :  { %v131_v13 = vand.u32 31, %v129_v12  ;;  %v130_v16 = vshrl.u32 %v129_v12, 5 }
  0xe6   :  { %v132_v14 = vsub.s32 32, %v131_v13  ;;  %v134_v18 = vshll.u32 %v294_v17, %v131_v13  ;;  %v137_v20 = vshll.u32 %v295_v19, %v131_v13  ;;  %v140_v24 = vshll.u32 %v296_v22, %v131_v13 }
  0xe7   :  { %v143_v27 = vshll.u32 %v297_v25, %v131_v13  ;;  %v146_v30 = vshll.u32 %v298_v28, %v131_v13  ;;  %vm149_vm4 = vcmp.lt.s32.totalorder %v130_v16, 1  ;;  %vm152_vm5 = vcmp.lt.s32.totalorder %v130_v16, 4 }
  0xe8   :  { %v135_v21 = vshrl.u32 %v295_v19, %v132_v14  ;;  %v138_v23 = vshrl.u32 %v296_v22, %v132_v14  ;;  %v141_v26 = vshrl.u32 %v297_v25, %v132_v14  ;;  %v144_v29 = vshrl.u32 %v298_v28, %v132_v14 }
  0xe9   :  { %v147_v32 = vshrl.u32 %v299_v31, %v132_v14  ;;  %v133_v42 = vshrl.u32 %v294_v17, %v132_v14  ;;  %vm151_vm6 = vcmp.lt.s32.totalorder %v130_v16, 3  ;;  %vm150_vm7 = vcmp.lt.s32.totalorder %v130_v16, 2 }
  0xea   :  { %v136_v34 = vor.u32 %v135_v21, %v134_v18  ;;  %v139_v35 = vor.u32 %v138_v23, %v137_v20  ;;  %v142_v36 = vor.u32 %v141_v26, %v140_v24  ;;  %v145_v37 = vor.u32 %v144_v29, %v143_v27 }
  0xeb   :  { %v148_v38 = vor.u32 %v147_v32, %v146_v30  ;;  %v102_v24 = vlaneseq }
  0xec   :  { %v154_v39 = vsel %vm152_vm5, %v142_v36, 2102212464  ;;  %v157_v40 = vsel %vm149_vm4, %v136_v34, %v139_v35  ;;  %v161_v41 = vsel %vm149_vm4, %v139_v35, %v142_v36  ;;  %v158_v43 = vsel %vm152_vm5, %v145_v37, 920167782 }
  0xed   :  { %v162_v44 = vsel %vm152_vm5, %v148_v38, 1326507024  ;;  %v159_v45 = vsel %vm151_vm6, %v142_v36, %v158_v43  ;;  %v153_v48 = vsel %vm149_vm4, %v133_v42, %v136_v34  ;;  %v155_v49 = vsel %vm151_vm6, %v139_v35, %v154_v39 }
  0xee   :  { %v163_v46 = vsel %vm151_vm6, %v145_v37, %v162_v44  ;;  %v160_v50 = vsel %vm150_vm7, %v157_v40, %v159_v45  ;;  %v156_v56 = vsel %vm150_vm7, %v153_v48, %v155_v49  ;;  %v103_v27 = vand.u32 127, %v102_v24 }
  0xef   :  { %v164_v51 = vsel %vm150_vm7, %v161_v41, %v163_v46  ;;  %v339_v54 = vmul.u32.u64.low %v165_v47, %v160_v50  ;;  %v340_v55 = vmul.u32.u64.high %v165_v47, %v160_v50, %v339_v54  ;;  %v172_v58 = vmul.u32 %v165_v47, %v156_v56 }
  0xf0   :  { %v336_v52 = vmul.u32.u64.low %v165_v47, %v164_v51  ;;  %v337_v53 = vmul.u32.u64.high %v165_v47, %v164_v51, %v336_v52  ;;  %v108_v30 = vand.u32 7, %v103_v27 }
  0xf1   :  { %v175_v57 = vadd.s32 1, %v340_v55 }
  0xf2   :  { %vm174_vm8 = vc.u32 %v337_v53, %v339_v54  ;;  %v173_v7 = vadd.s32 %v339_v54, %v337_v53  ;;  %vm116_vm14 = vcmp.ne.s32.totalorder %v108_v30, 7 }
  0xf3   :  { %v176_v59 = vsel %vm174_vm8, %v175_v57, %v340_v55 }
  0xf4   :  { %v177_v60 = vadd.s32 %v176_v59, %v172_v58 }
  0xf6   :  { %v178_v61 = vadd.s32 536870912, %v177_v60 }
  0xf8   :  { %v179_v62 = vshrl.u32 %v178_v61, 30 }
  0xfa   :  { %v180_v63 = vshll.u32 %v179_v62, 30  ;;  %v203_v22 = vsub.s32 4, %v179_v62 }
  0xfc   :  { %v181_v0 = vsub.s32 %v177_v60, %v180_v63  ;;  %v204_v25 = vsel %vm119_vm10, %v203_v22, %v179_v62 }
  0xfd   :  { %v206_v26 = vsel %vm118_vm11, 0, %v204_v25 }
  0xfe   :  { %v183_v1 = vsub.s32 0, %v181_v0  ;;  %v210_v28 = vand.u32 3, %v206_v26 }
 0x100   :  { %v241_v2 = vmin.u32 %v183_v1, %v181_v0  ;;  %vm215_vm12 = vcmp.eq.s32.totalorder %v210_v28, 2  ;;  %vm212_vm13 = vcmp.eq.s32.totalorder %v210_v28, 0  ;;  %vm211_vm15 = vcmp.lt.s32.totalorder %v210_v28, 2 }
 0x102   :  { %v185_v3 = vclz %v241_v2 }
 0x104   :  { %v242_v4 = vadd.s32 4294967294, %v185_v3 }
 0x106   :  { %vm243_vm9 = vcmp.lt.s32.totalorder %v242_v4, 0 }
 0x107   :  { %v188_v6 = vsel %vm243_vm9, 0, %v242_v4 }
 0x108   :  { %v189_v8 = vsub.s32 32, %v188_v6  ;;  %v193_v9 = vsub.s32 4294967266, %v188_v6  ;;  %v190_v10 = vshll.u32 %v181_v0, %v188_v6 }
 0x10a   :  { %v191_v12 = vshrl.u32 %v173_v7, %v189_v8  ;;  %v194_v13 = vadd.s32 127, %v193_v9 }
 0x10c   :  { %v192_v14 = vor.u32 %v191_v12, %v190_v10  ;;  %v195_v15 = vshll.u32 %v194_v13, 23 }
 0x10e   :  { %v196_v16 = vor.u32 4788187, %v195_v15  ;;  %v199_v18 = vcvt.s32.f32 %v192_v14 }
 0x110   :  { %v197_v17 = vand.u32 2147483647, %v196_v16 }
 0x112   :  { %v200_v19 = vmul.f32 %v199_v18, %v197_v17 }
 0x114   :  { %v201_v20 = vxor.u32 2147483648, %v200_v19 }
 0x116   :  { %v202_v21 = vsel %vm119_vm10, %v201_v20, %v200_v19 }
 0x117   :  { %v205_v23 = vsel %vm118_vm11, %v330_v5, %v202_v21 }
 0x118   :  { %264 = vcosq.f32 %v205_v23 }
 0x119   :  { %266 = vsinq.f32 %v205_v23 }
 0x122   :  { %v265_v29 = vpop.eup %264 }
 0x123   :  { %v267_v31 = vpop.eup %266  ;;  %v216_v32 = vxor.u32 2147483648, %v265_v29 }
 0x124   :  { %v213_v33 = vxor.u32 2147483648, %v267_v31 }
 0x125   :  { %v217_v34 = vsel %vm215_vm12, %v216_v32, %v267_v31 }
 0x126   :  { %v214_v11 = vsel %vm212_vm13, %v265_v29, %v213_v33 }
 0x127   :  { %v218_v35 = vsel %vm211_vm15, %v214_v11, %v217_v34 }
 0x128   :  { %v219_v36 = vsel %vm209_vm0, nan, %v218_v35 }
 0x129   :  { %v220_v37 = vsel %vm116_vm14, %v219_v36, %v330_v5 }
 0x12a   :  { %222 = vst.msk [vmem:[#allocation2] sm:$0xff] %vm221_vm1, %v220_v37 }
 0x12b   :  { %279 = shalt.err (!%p276_p4)
}
 0x12c   :  { %s280_s20 = scalar_lea.hbm %s367_s3, 128 }
 0x12d   :  { %p281_p5 = scmp.ne.s32.totalorder %s367_s3, %s280_s20  ;;  %p284_p6 = scmp.lt.u32.totalorder %s280_s20, %s367_s3 }
 0x12f   :  { %p286_p7 = pnand %p284_p6, %p281_p5 }
 0x131   :  { %289 = shalt.err (!%p286_p7)
}
 0x132   :  { %232 = dma.vmem_to_hbm [thread:$0]  %s230_s1, 128, %s367_s3, [#allocation3]  }
 0x133   :  { %290 = dma.done.wait [#allocation3], 128  }
 0x134   :  { %291 = vsyncadd [#allocation3], 4294967168 }
 0x135   :  { %236 = vsyncpa [#allocation3], 1 }

</bundles_post_ra>
